<compile_context>
chip_gen: v6e
topology: v6e:2x2x1
jax: 0.10.0
libtpu: 0.0.40
codegen_flags: <defaults>
</compile_context>

<pallas_src>
import functools

import jax
import jax.numpy as jnp
from jax.experimental import pallas as pl
from jax.experimental.pallas import tpu as pltpu


def _round_up(x, m):
    return ((x + m - 1) // m) * m


def _pml_kernel(yhat_ref, y_ref, mask_ref, out_ref, *,
                epsilon, apply_softmax, approx_recip, batch, tile_b,
                mask_rows):
    yhat = yhat_ref[...].astype(jnp.float32)     # (tile_b, n_pad)
    y = y_ref[...].astype(jnp.float32)           # (tile_b, n_pad)
    mask = mask_ref[...].astype(jnp.float32)     # (n_pad, n_pad), resident

    # y_mask[b, j] = sum_t y[b, t] * mask[t, j]  ->  y @ mask on the MXU.
    y_mask = jnp.dot(y, mask, preferred_element_type=jnp.float32)

    if apply_softmax:
        m = jnp.max(yhat, axis=1, keepdims=True)            # XLU
        e = jnp.exp(yhat - m)                                # EUP
        num = jnp.sum(y_mask * e, axis=1, keepdims=True)     # (tile_b, 1)
        den = jnp.sum(e, axis=1, keepdims=True)              # (tile_b, 1)
        # Fold the softmax normalization into the per-row scalar: one
        # reciprocal per row (EUP when approx) instead of n_pad VPU divides.
        dots = num * pl.reciprocal(den, approx=approx_recip)
    else:
        dots = jnp.sum(y_mask * yhat, axis=1, keepdims=True)

    # Keep this reciprocal exact: its error lands directly in the loss value.
    loss = 1.0 / (dots - epsilon) - 1.0                      # (tile_b, 1)

    if mask_rows:
        # Zero out padded batch rows (only compiled in when B % tile_b != 0).
        i = pl.program_id(0)
        row = jax.lax.broadcasted_iota(jnp.int32, loss.shape, 0) + i * tile_b
        loss = jnp.where(row < batch, loss, 0.0)

    # Lane-dense, unmasked store of this tile's partial sum.
    out_ref[...] = jnp.full((8, 128), jnp.sum(loss), dtype=jnp.float32)


def _choose_tile_b(batch, n_pad):
    # Keep the two double-buffered (tile_b, n_pad) f32 streams under ~16 MiB
    # so the tile also fits v7x's smaller scoped VMEM with headroom.
    budget = 16 * 1024 * 1024
    per_row = 2 * 2 * n_pad * 4          # 2 inputs x 2 pipeline buffers x f32
    tb = max(8, (budget // per_row) // 8 * 8)
    tb = min(tb, 1024)                   # amortizes the ~0.35us per-step cost
    tb = min(tb, _round_up(batch, 8))
    return tb


def proximal_masked_loss(y_hat, y, mask, *, epsilon=1e-9, softmax=True,
                         approx_recip=True, tile_b=None):
    """Scalar ProximalMaskedLoss (matches the PyTorch module's forward)."""
    B, n = y_hat.shape
    assert y.shape == (B, n) and mask.shape == (n, n)

    n_pad = _round_up(n, 128)
    if tile_b is None:
        tile_b = _choose_tile_b(B, n_pad)
    tile_b = max(8, _round_up(min(tile_b, _round_up(B, 8)), 8))
    b_pad = _round_up(B, tile_b)
    num_tiles = b_pad // tile_b

    # Cast once; pad only when the shape actually needs it (avoids extra HBM
    # copies on already-aligned inputs).  Logits get a large negative pad so
    # exp() underflows to 0; y/mask get zeros; padded batch rows are zeros and
    # get masked out inside the kernel.
    y_hat_p = y_hat.astype(jnp.float32)
    y_p = y.astype(jnp.float32)
    mask_p = mask.astype(jnp.float32)
    if n_pad != n:
        neg = jnp.float32(-1e30) if softmax else jnp.float32(0.0)
        y_hat_p = jnp.pad(y_hat_p, ((0, 0), (0, n_pad - n)),
                          constant_values=neg)
        y_p = jnp.pad(y_p, ((0, 0), (0, n_pad - n)))
        mask_p = jnp.pad(mask_p, ((0, n_pad - n), (0, n_pad - n)))
    if b_pad != B:
        y_hat_p = jnp.pad(y_hat_p, ((0, b_pad - B), (0, 0)))
        y_p = jnp.pad(y_p, ((0, b_pad - B), (0, 0)))

    # VMEM budget: double-buffered streams + resident mask + outputs + slack.
    # TODO(synk): K-tile the y @ mask contraction once n_pad^2 * 4B no longer
    # fits VMEM (n in the several-thousands range, esp. on v7x's 64 MiB).
    stream_bytes = 2 * 2 * tile_b * n_pad * 4
    mask_bytes = 2 * n_pad * n_pad * 4
    out_bytes = 2 * 8 * 128 * 4
    vmem_limit = int(min(96 << 20,
                         max(32 << 20,
                             stream_bytes + mask_bytes + out_bytes + (8 << 20))))

    kernel = functools.partial(_pml_kernel, epsilon=epsilon,
                               apply_softmax=softmax,
                               approx_recip=approx_recip,
                               batch=B, tile_b=tile_b,
                               mask_rows=(b_pad != B))

    out = pl.pallas_call(
        kernel,
        out_shape=jax.ShapeDtypeStruct((num_tiles * 8, 128), jnp.float32),
        grid_spec=pltpu.PrefetchScalarGridSpec(
            num_scalar_prefetch=0,
            grid=(num_tiles,),
            in_specs=[
                pl.BlockSpec((tile_b, n_pad), lambda i: (i, 0)),
                pl.BlockSpec((tile_b, n_pad), lambda i: (i, 0)),
                # Constant block index -> mask DMA'd once, resident in VMEM.
                pl.BlockSpec((n_pad, n_pad), lambda i: (0, 0)),
            ],
            out_specs=pl.BlockSpec((8, 128), lambda i: (i, 0)),
        ),
        compiler_params=pltpu.CompilerParams(
            dimension_semantics=("parallel",),
            vmem_limit_bytes=vmem_limit,
        ),
    )(y_hat_p, y_p, mask_p)

    partials = out[0::8, 0]                   # one partial sum per batch tile
    return jnp.sum(partials) / jnp.float32(B)


def generate_mask(n, p=1):
    """mask[t, i] = (1 / (|i - t| + 1)) ** p — same as PyTorch __generate_mask."""
    idx = jnp.arange(n, dtype=jnp.float32)
    return (1.0 / (jnp.abs(idx[None, :] - idx[:, None]) + 1.0)) ** p


def _reference(y_hat, y, mask, epsilon=1e-9, softmax=True):
    if softmax:
        y_hat = jax.nn.softmax(y_hat, axis=1)
    y_mask = jnp.sum(mask[None, :, :] * y[:, :, None], axis=1)
    return jnp.mean(1.0 / (jnp.sum(y_mask * y_hat, axis=1) - epsilon) - 1.0)


if __name__ == "__main__":
    B, n, p = 64, 16, 1
    key = jax.random.PRNGKey(0)
    k1, k2 = jax.random.split(key)

    y_hat = jax.random.normal(k1, (B, n), dtype=jnp.float32)
    labels = jax.random.randint(k2, (B,), 0, n)
    y = jax.nn.one_hot(labels, n, dtype=jnp.float32)
    mask = generate_mask(n, p)

    # tile_b=16 -> 4 batch tiles, exercising the grid / resident-mask path.

    # 1) softmax path, exact reciprocal everywhere -> tight tolerance.
    out_exact = proximal_masked_loss(y_hat, y, mask, epsilon=1e-9,
                                     softmax=True, approx_recip=False,
                                     tile_b=16)
    out_exact = jax.block_until_ready(out_exact)
    ref = _reference(y_hat, y, mask, epsilon=1e-9, softmax=True)
    assert jnp.allclose(out_exact, ref, rtol=1e-5, atol=1e-5), (out_exact, ref)

    # 2) softmax path with EUP approx reciprocal on the softmax denominator
    #    (the performance default) -> small approximation error allowed.
    out = proximal_masked_loss(y_hat, y, mask, epsilon=1e-9, softmax=True,
                               approx_recip=True, tile_b=16)
    out = jax.block_until_ready(out)
    assert jnp.allclose(out, ref, rtol=1e-2, atol=1e-2), (out, ref)

    # 3) identity-activation path (softmax=False) -> tight tolerance.
    probs = jax.nn.softmax(y_hat, axis=1)
    out2 = proximal_masked_loss(probs, y, mask, epsilon=1e-9, softmax=False,
                                tile_b=16)
    out2 = jax.block_until_ready(out2)
    ref2 = _reference(probs, y, mask, epsilon=1e-9, softmax=False)
    assert jnp.allclose(out2, ref2, rtol=1e-5, atol=1e-5), (out2, ref2)

    # 4) non-divisible batch (B=50, tile_b=16) -> exercises in-kernel row mask.
    out3 = proximal_masked_loss(y_hat[:50], y[:50], mask, epsilon=1e-9,
                                softmax=True, approx_recip=False, tile_b=16)
    out3 = jax.block_until_ready(out3)
    ref3 = _reference(y_hat[:50], y[:50], mask, epsilon=1e-9, softmax=True)
    assert jnp.allclose(out3, ref3, rtol=1e-5, atol=1e-5), (out3, ref3)

    print("KERNEL_OK")
</pallas_src>

<mosaic_0001>
module attributes {stable_mosaic.version = 11 : i64} {
  func.func @_pml_kernel(%arg0: i32, %arg1: memref<16x128xf32, #tpu.memory_space<vmem>>, %arg2: memref<16x128xf32, #tpu.memory_space<vmem>>, %arg3: memref<128x128xf32, #tpu.memory_space<vmem>>, %arg4: memref<8x128xf32, #tpu.memory_space<vmem>>) attributes {dimension_semantics = [#tpu.dimension_semantics<parallel>], iteration_bounds = array<i64: 4>, scalar_prefetch = 0 : i64, scratch_operands = 0 : i64, tpu.core_type = #tpu.core_type<tc>, window_params = [{transform_indices = @transform_0, window_bounds = array<i64: 16, 128>}, {transform_indices = @transform_1, window_bounds = array<i64: 16, 128>}, {pipeline_mode = #tpu.pipeline_mode<synchronous>, transform_indices = @transform_2, window_bounds = array<i64: 128, 128>}, {transform_indices = @transform_3, window_bounds = array<i64: 8, 128>}]} {
    %c0 = arith.constant 0 : index
    %c0_0 = arith.constant 0 : index
    %0 = vector.load %arg1[%c0, %c0_0] : memref<16x128xf32, #tpu.memory_space<vmem>>, vector<16x128xf32>
    %c0_1 = arith.constant 0 : index
    %c0_2 = arith.constant 0 : index
    %1 = vector.load %arg2[%c0_1, %c0_2] : memref<16x128xf32, #tpu.memory_space<vmem>>, vector<16x128xf32>
    %c0_3 = arith.constant 0 : index
    %c0_4 = arith.constant 0 : index
    %2 = vector.load %arg3[%c0_3, %c0_4] : memref<128x128xf32, #tpu.memory_space<vmem>>, vector<128x128xf32>
    %cst = arith.constant dense<0.000000e+00> : vector<16x128xf32>
    %3 = tpu.matmul %1, %2, %cst {dimension_numbers = #tpu.dot_dimension_numbers<[1], [0], [0], [1], [0, 0, 1, 1], [], []>} : vector<16x128xf32>, vector<128x128xf32>, vector<16x128xf32> -> vector<16x128xf32>
    %cst_5 = arith.constant dense<0xFF800000> : vector<16xf32>
    %4 = vector.multi_reduction <maximumf>, %0, %cst_5 [1] : vector<16x128xf32> to vector<16xf32>
    %5 = vector.shape_cast %4 : vector<16xf32> to vector<16x1xf32>
    %6 = vector.broadcast %5 : vector<16x1xf32> to vector<16x128xf32>
    %7 = arith.subf %0, %6 : vector<16x128xf32>
    %8 = math.exp %7 : vector<16x128xf32>
    %9 = arith.mulf %3, %8 : vector<16x128xf32>
    %cst_6 = arith.constant dense<0.000000e+00> : vector<16xf32>
    %10 = vector.multi_reduction <add>, %9, %cst_6 [1] : vector<16x128xf32> to vector<16xf32>
    %11 = vector.shape_cast %10 : vector<16xf32> to vector<16x1xf32>
    %cst_7 = arith.constant dense<0.000000e+00> : vector<16xf32>
    %12 = vector.multi_reduction <add>, %8, %cst_7 [1] : vector<16x128xf32> to vector<16xf32>
    %13 = vector.shape_cast %12 : vector<16xf32> to vector<16x1xf32>
    %14 = tpu.reciprocal %13 : vector<16x1xf32> -> vector<16x1xf32>
    %15 = arith.mulf %11, %14 : vector<16x1xf32>
    %cst_8 = arith.constant 9.99999971E-10 : f32
    %16 = vector.broadcast %cst_8 : f32 to vector<16x1xf32>
    %17 = arith.subf %15, %16 : vector<16x1xf32>
    %cst_9 = arith.constant 1.000000e+00 : f32
    %18 = vector.broadcast %cst_9 : f32 to vector<16x1xf32>
    %19 = arith.divf %18, %17 : vector<16x1xf32>
    %cst_10 = arith.constant 1.000000e+00 : f32
    %20 = vector.broadcast %cst_10 : f32 to vector<16x1xf32>
    %21 = arith.subf %19, %20 : vector<16x1xf32>
    %22 = vector.shape_cast %21 : vector<16x1xf32> to vector<1x16x1xf32>
    %cst_11 = arith.constant dense<0.000000e+00> : vector<1xf32>
    %23 = vector.multi_reduction <add>, %22, %cst_11 [1, 2] : vector<1x16x1xf32> to vector<1xf32>
    %24 = vector.shape_cast %23 : vector<1xf32> to vector<1x1x1xf32>
    %25 = vector.extract %24[0, 0, 0] : f32 from vector<1x1x1xf32>
    %26 = vector.broadcast %25 : f32 to vector<8x128xf32>
    %c0_12 = arith.constant 0 : index
    %c0_13 = arith.constant 0 : index
    %27 = vector.load %arg4[%c0_12, %c0_13] : memref<8x128xf32, #tpu.memory_space<vmem>>, vector<8x128xf32>
    tpu.vector_store %arg4[%c0_12, %c0_13], %26 {strides = array<i32>} : memref<8x128xf32, #tpu.memory_space<vmem>>, vector<8x128xf32>,
    return
  }
  func.func @transform_0(%arg0: i32) -> (i32, i32) {
    %c0_i32 = arith.constant 0 : i32
    %c0_i32_0 = arith.constant 0 : i32
    return %arg0, %c0_i32 : i32, i32
  }
  func.func @transform_1(%arg0: i32) -> (i32, i32) {
    %c0_i32 = arith.constant 0 : i32
    %c0_i32_0 = arith.constant 0 : i32
    return %arg0, %c0_i32 : i32, i32
  }
  func.func @transform_2(%arg0: i32) -> (i32, i32) {
    %c0_i32 = arith.constant 0 : i32
    %c0_i32_0 = arith.constant 0 : i32
    %c0_i32_1 = arith.constant 0 : i32
    return %c0_i32, %c0_i32_0 : i32, i32
  }
  func.func @transform_3(%arg0: i32) -> (i32, i32) {
    %c0_i32 = arith.constant 0 : i32
    %c0_i32_0 = arith.constant 0 : i32
    return %arg0, %c0_i32 : i32, i32
  }
}

</mosaic_0001>

<bundles_post_ra>
// kernel: tpu_custom_call.1
= control target key start
LH: loop header
LB: loop body
LE: loop exit
PB: predicated region body
PF: predicated region fallthrough
CT: control target
= control target key end

     0   :  { %s1067_s0 = inlined_call_operand.hbm [shape: f32[64,128], index: 0, kind: input, shape index: {}]   ;;  %s1068_s1 = inlined_call_operand.hbm [shape: f32[64,128], index: 1, kind: input, shape index: {}]   ;;  %s1069_s2 = inlined_call_operand.hbm [shape: f32[128,128], index: 2, kind: input, shape index: {}]   ;;  %s1070_s3 = inlined_call_operand.hbm [shape: f32[32,128], index: 3, kind: output, shape index: {}]  }
   0x1   :  { %1078 = sst [smem:[#allocation13_spill]] %s1067_s0 }
   0x2   :  { %1079 = sst [smem:[#allocation14_spill]] %s1069_s2 }
   0x3   :  { %8 = vsyncpa [#allocation3], 0 }
   0x4   :  { %10 = vsyncpa [#allocation3 + $0x1], 0 }
   0x5   :  { %11 = vsyncpa [#allocation6], 0 }
   0x6   :  { %13 = vsyncpa [#allocation6 + $0x1], 0 }
   0x7   :  { %14 = vsyncpa [#allocation4], 0 }
   0x8   :  { %16 = vsyncpa [#allocation4 + $0x1], 0  ;;  %s841_s12 = smov 0   ;;  %s843_s13 = smov 0  }
   0x9   :  { %s845_s14 = smov 0   ;;  %s847_s15 = smov 0  }
   0xa LB: > { %s862_s16 = sadd.s32 4294967295, %s813_s15   ;;  %s503_s17 = sadd.s32 4294967294, %s813_s15   ;;  %s813_s15 = sphi %s847_s15, %s1099_s15   ;;  %s809_s14 = sphi %s845_s14, %s1098_s14   ;;  %s805_s13 = sphi %s843_s13, %s1097_s13   ;;  %s801_s12 = sphi %s841_s12, %s1096_s12  }
   0xb   : > { %p42_p0 = scmp.ne.s32.totalorder %s805_s13, %s801_s12  ;;  %p1075_p1 = scmp.eq.s32.totalorder %s862_s16, 0 }
   0xc   : > { %p119_p3 = scmp.eq.s32.totalorder %s503_s17, 3  ;;  %p504_p5 = scmp.ge.s32.totalorder %s813_s15, 1 }
   0xd   : > { %p871_p4 = por %p1075_p1, %p42_p0  ;;  %p126_p7 = scmp.lt.s32.totalorder %s813_s15, 5 }
   0xe   : > { %p876_p6 = por %p119_p3, %p42_p0  ;;  %s815_s21 = smov [#allocation7]  }
   0xf   : > { %s1080_s18 = scalar_select %p871_p4, 1, 0 }
  0x10   : > { %s1081_s19 = scalar_select %p876_p6, 1, 0 }
  0x11   : > { %p881_p8 = pnand %p504_p5, %p126_p7  ;;  %s138_s22 = sshll.u32 %s815_s21, 4  ;;  %s139_s22 = int_to_ptr.vmem [resolvable:$true] %s138_s22 }
  0x12   : > { %s894_s24 = sadd.s32 1, %s813_s15   ;;  %s29_s25 = sadd.s32 1, %s809_s14 }
  0x13   : > { %p593_p9 = pneg %p881_p8  ;;  %s26_s26 = ssub.s32 %s813_s15, %s894_s24 }
  0x14   : > { %s670_s27 = scalar_lea.vmem %s139_s22, 2048  ;;  %p678_p3 = scmp.lt.s32.totalorder %s139_s22, %s139_s22 }
  0x15   : > { %p889_p10 = pnand %p593_p9, %p1075_p1  ;;  %p671_p12 = scmp.ne.s32.totalorder %s139_s22, %s670_s27 }
  0x16   : > { %p679_p5 = scmp.lt.s32.totalorder %s670_s27, %s670_s27 }
  0x17   : > { %p661_p11 = pneg %p889_p10 }
  0x18   : > { %p680_p7 = por %p679_p5, %p678_p3 }
  0x19   : > { %p673_p13 = pnand %p671_p12, %p661_p11 }
  0x1b   : > { %p674_p0 = pneg %p673_p13 }
  0x1d   : > { %p681_p2 = pnand %p680_p7, %p674_p0 }
  0x1f   : > { %684 = shalt.err (!%p681_p2)
}
  0x20   : > { %s1071_s28 = smov 128   ;;  %s1073_s29 = smov 8  }
  0x21   : > { %s1084_s2 = sld [smem:[#allocation14_spill]]  ;;  %p27_p2 = scmp.eq.s32.totalorder %s26_s26, 0 }
  0x22   : > { %p36_p9 = scmp.ne.s32.totalorder %s809_s14, %s805_s13  ;;  %p37_p11 = scmp.eq.s32.totalorder %s813_s15, 0 }
  0x23   : > { %p609_p12 = scmp.lt.s32.totalorder %s813_s15, 4  ;;  %p1085_p0 = scmp.eq.s32.totalorder %s862_s16, 3 }
  0x24   : > { %s914_s5 = scalar_select %p27_p2, %s809_s14, %s29_s25  }
  0x25   : > { %p38_p13 = por %p37_p11, %p36_p9  ;;  %p918_p3 = por %p1085_p0, %p36_p9 }
  0x26   : > { %s152_s7 = sand.u32 1, %s809_s14   ;;  %s526_s8 = sshll.u32 %s813_s15, 8 }
  0x27   : > { %596 = dma.hbm_to_vmem [thread:$0]  (!%p889_p10), %s1084_s2, 2048, %s139_s22, [#allocation6], %s1071_s28, %s1071_s28, %s1073_s29  }
  0x28   : > { %s1086_s6 = scalar_select %p918_p3, 1, 0 }
  0x29   : > { %s924_s9 = sshll.u32 %s152_s7, 4  ;;  %s1087_s0 = sld [smem:[#allocation13_spill]] }
  0x2a   : > { %s156_s21 = scalar_lea.vmem [#allocation2], %s924_s9  ;;  %p932_p10 = pnand %p609_p12, %p38_p13 }
  0x2b   : > { %s163_s22 = sshll.u32 %s156_s21, 4  ;;  %s941_s27 = scalar_lea.hbm %s1068_s1, %s526_s8  ;;  %s936_s22 = int_to_ptr.vmem [resolvable:$true] %s163_s22 }
  0x2c   : > { %s943_s30 = scalar_lea.sflag [#allocation3], %s152_s7  ;;  %p687_p7 = pneg %p932_p10 }
  0x2f   : > { %s929_s17 = scalar_lea.hbm %s1087_s0, %s526_s8  ;;  %s690_s21 = scalar_lea.hbm %s1087_s0, 1024 }
  0x30   : > { %s685_s4 = scalar_lea.hbm %s929_s17, 256  ;;  %p691_p11 = scmp.lt.s32.totalorder %s929_s17, %s1087_s0 }
  0x31   : > { %p686_p5 = scmp.ne.s32.totalorder %s929_s17, %s685_s4  ;;  %p692_p12 = scmp.lt.s32.totalorder %s690_s21, %s685_s4 }
  0x33   : > { %p688_p2 = pnand %p687_p7, %p686_p5  ;;  %p693_p13 = por %p692_p12, %p691_p11 }
  0x35   : > { %p689_p9 = pneg %p688_p2 }
  0x37   : > { %p694_p0 = pnand %p693_p13, %p689_p9 }
  0x39   : > { %697 = shalt.err (!%p694_p0)
}
  0x3a   : > { %s698_s7 = scalar_lea.vmem %s936_s22, 256  ;;  %s818_s8 = smov [#allocation2]  }
  0x3b   : > { %p699_p1 = scmp.ne.s32.totalorder %s936_s22, %s698_s7  ;;  %s703_s25 = sshll.u32 %s818_s8, 4  ;;  %s704_s25 = int_to_ptr.vmem [resolvable:$false] %s703_s25 }
  0x3c   : > { %s705_s26 = scalar_lea.vmem %s704_s25, 512  ;;  %p706_p6 = scmp.lt.s32.totalorder %s936_s22, %s704_s25 }
  0x3d   : > { %p701_p5 = pnand %p699_p1, %p687_p7  ;;  %p707_p3 = scmp.lt.s32.totalorder %s705_s26, %s698_s7 }
  0x3f   : > { %p702_p2 = pneg %p701_p5  ;;  %p708_p4 = por %p707_p3, %p706_p6 }
  0x41   : > { %p709_p11 = pnand %p708_p4, %p702_p2 }
  0x43   : > { %712 = shalt.err (!%p709_p11)
}
  0x44   : > { %s1089_s28 = smov 8   ;;  %s1090_s29 = smov 128  }
  0x45   : > { %600 = dma.hbm_to_vmem [thread:$0]  (!%p932_p10), %s929_s17, 256, %s936_s22, %s943_s30, %s1090_s29, %s1090_s29, %s1089_s28  }
  0x46   : > { %s177_s4 = scalar_lea.vmem [#allocation5], %s924_s9  ;;  %s173_s11 = sand.u32 1, %s813_s15  }
  0x47   : > { %s184_s10 = sshll.u32 %s177_s4, 4  ;;  %s174_s21 = scalar_lea.sflag [#allocation6], %s173_s11  ;;  %s975_s10 = int_to_ptr.vmem [resolvable:$true] %s184_s10 }
  0x48   : > { %s713_s7 = scalar_lea.hbm %s941_s27, 256  ;;  %s718_s26 = scalar_lea.hbm %s1068_s1, 1024 }
  0x49   : > { %p714_p1 = scmp.ne.s32.totalorder %s941_s27, %s713_s7  ;;  %p719_p3 = scmp.lt.s32.totalorder %s941_s27, %s1068_s1 }
  0x4a   : > { %p720_p9 = scmp.lt.s32.totalorder %s718_s26, %s713_s7 }
  0x4b   : > { %p716_p4 = pnand %p714_p1, %p687_p7 }
  0x4c   : > { %p721_p12 = por %p720_p9, %p719_p3 }
  0x4d   : > { %p717_p6 = pneg %p716_p4 }
  0x4f   : > { %p722_p13 = pnand %p721_p12, %p717_p6 }
  0x51   : > { %725 = shalt.err (!%p722_p13)
}
  0x52   : > { %s726_s9 = scalar_lea.vmem %s975_s10, 256  ;;  %s819_s17 = smov [#allocation5]  }
  0x53   : > { %p727_p0 = scmp.ne.s32.totalorder %s975_s10, %s726_s9  ;;  %s731_s22 = sshll.u32 %s819_s17, 4  ;;  %s732_s22 = int_to_ptr.vmem [resolvable:$false] %s731_s22 }
  0x54   : > { %s733_s30 = scalar_lea.vmem %s732_s22, 512  ;;  %p734_p11 = scmp.lt.s32.totalorder %s975_s10, %s732_s22 }
  0x55   : > { %p729_p5 = pnand %p727_p0, %p687_p7  ;;  %p735_p1 = scmp.lt.s32.totalorder %s733_s30, %s726_s9 }
  0x57   : > { %p730_p2 = pneg %p729_p5  ;;  %p736_p4 = por %p735_p1, %p734_p11 }
  0x59   : > { %p737_p3 = pnand %p736_p4, %p730_p2 }
  0x5b   : > { %740 = shalt.err (!%p737_p3)
}
  0x5c   : > { %603 = dma.hbm_to_vmem [thread:$0]  (!%p932_p10), %s941_s27, 256, %s975_s10, %s174_s21, %s1090_s29, %s1090_s29, %s1089_s28  }
  0x5d   : > { %196 = sbr.rel (%p881_p8) target bundleno = 710 (0x2c6), region = 32  ;;  %s1005_s0 = sand.u32 (!%p881_p8), 1, %s805_s13  }
  0x5e   : > { %s514_s2 = sshll.u32 (!%p881_p8), %s1005_s0, 4  ;;  %s199_s4 = scalar_lea.sflag (!%p881_p8), [#allocation3], %s1005_s0 }
  0x5f   : > { %s202_s11 = scalar_lea.vmem (!%p881_p8), [#allocation2], %s514_s2  ;;  %p1091_p7 = scmp.ne.s32.totalorder (!%p881_p8), %s1080_s18, 0 }
  0x62   : > { %784 = dma.done.wait (%p1091_p7), %s199_s4, 256  }
  0x63   : > { %786 = vsyncadd (%p1091_p7), %s199_s4, 4294967040  ;;  %s207_s23 = sand.u32 1, %s862_s16   ;;  %s1014_s20 = scalar_lea.vmem [#allocation5], %s514_s2 }
  0x64   : > { %s208_s27 = scalar_lea.sflag [#allocation6], %s207_s23 }
  0x65   : > { %788 = dma.done.wait (%p1091_p7), %s208_s27, 256  }
  0x66   : > { %790 = vsyncadd (%p1091_p7), %s208_s27, 4294967040  ;;  %p1092_p8 = scmp.eq.s32.totalorder %s862_s16, 0 }
  0x68   : > { %792 = dma.done.wait (%p1092_p8), [#allocation6], 2048   ;;  %p1093_p10 = pmov %p1092_p8 }
  0x69   : > { %v264_v0 = vld [vmem:[#allocation7 + $0x78] sm:$0xff]  ;;  %v263_v1 = vld [vmem:[#allocation7 + $0x70] sm:$0xff]  ;;  %v262_v2 = vld [vmem:[#allocation7 + $0x68] sm:$0xff]  ;;  %vm372_vm0 = vcmask 7168   ;;  %s517_s18 = sshll.u32 %s1005_s0, 3  ;;  %s523_s10 = sshll.u32 %s862_s16, 7 }
  0x6a   : > { %794 = vsyncadd (%p1093_p10), [#allocation6], 4294965248  ;;  %546 = vmatprep.subr.mxu0 %v264_v0  ;;  %v261_v3 = vld [vmem:[#allocation7 + $0x60] sm:$0xff]  ;;  %v260_v5 = vld [vmem:[#allocation7 + $0x58] sm:$0xff]  ;;  %s242_s28 = scalar_lea.vmem [#allocation8], %s517_s18  ;;  %s399_s25 = scalar_lea.hbm %s1070_s3, %s523_s10 }
  0x6b   : > { %547 = vmatpush3.msra.mxu0 %v264_v0  ;;  %v247_v4 = vld [vmem:[%s1014_s20] sm:$0xff]  ;;  %v246_v8 = vld [vmem:[%s202_s11 + $0x8] sm:$0xff]  ;;  %s401_s29 = sshll.u32 %s242_s28, 4  ;;  %s388_s26 = scalar_lea.sflag [#allocation4], %s1005_s0  ;;  %s1028_s29 = int_to_ptr.vmem [resolvable:$true] %s401_s29 }
  0x6c   : > { %548 = vmatprep.subr.mxu0 %v263_v1  ;;  %578 = vmatprep.mubr.f32.mxu0 %v247_v4  ;;  %v245_v6 = vld [vmem:[%s202_s11] sm:$0xff]  ;;  %v258_v9 = vld [vmem:[#allocation7 + $0x48] sm:$0xff]  ;;  %v256_v11 = vld [vmem:[#allocation7 + $0x38] sm:$0xff]  ;;  %s741_s9 = scalar_lea.vmem %s1028_s29, 128  ;;  %p1094_p9 = scmp.ne.s32.totalorder %s1086_s6, 0 }
  0x6d   : > { %549 = vmatpush3.msra.mxu0 %v263_v1  ;;  %340 = vmax.xlane.f32.xlu0 %v245_v6  ;;  %v259_v7 = vld [vmem:[#allocation7 + $0x50] sm:$0xff]  ;;  %v257_v10 = vld [vmem:[#allocation7 + $0x40] sm:$0xff]  ;;  %v254_v13 = vld [vmem:[#allocation7 + $0x28] sm:$0xff]  ;;  %p742_p6 = scmp.ne.s32.totalorder %s1028_s29, %s741_s9  ;;  %s820_s17 = smov [#allocation8]  }
  0x6e   : > { %550 = vmatprep.subr.mxu0 %v262_v2  ;;  %v255_v12 = vld [vmem:[#allocation7 + $0x30] sm:$0xff]  ;;  %v253_v14 = vld [vmem:[#allocation7 + $0x20] sm:$0xff]  ;;  %v252_v15 = vld [vmem:[#allocation7 + $0x18] sm:$0xff]  ;;  %s745_s16 = sshll.u32 %s820_s17, 4  ;;  %s746_s16 = int_to_ptr.vmem [resolvable:$false] %s745_s16 }
  0x6f   : > { %551 = vmatpush3.msra.mxu0 %v262_v2  ;;  %v251_v16 = vld [vmem:[#allocation7 + $0x10] sm:$0xff]  ;;  %v250_v17 = vld [vmem:[#allocation7 + $0x8] sm:$0xff]  ;;  %v249_v18 = vld [vmem:[#allocation7] sm:$0xff]  ;;  %p743_p12 = pnand %p742_p6, %p1094_p9  ;;  %s747_s22 = scalar_lea.vmem %s746_s16, 256 }
  0x70   : > { %552 = vmatprep.subr.mxu0 %v261_v3  ;;  %v248_v19 = vld [vmem:[%s1014_s20 + $0x8] sm:$0xff]  ;;  %p748_p0 = scmp.lt.s32.totalorder %s1028_s29, %s746_s16  ;;  %p749_p5 = scmp.lt.s32.totalorder %s747_s22, %s741_s9 }
  0x71   : > { %553 = vmatpush3.msra.mxu0 %v261_v3  ;;  %342 = vmax.xlane.f32.xlu0 %v246_v8  ;;  %p744_p13 = pneg %p743_p12 }
  0x72   : > { %554 = vmatprep.subr.mxu0 %v260_v5  ;;  %p750_p2 = por %p749_p5, %p748_p0 }
  0x73   : > { %555 = vmatpush3.msra.mxu0 %v260_v5 }
  0x74   : > { %556 = vmatprep.subr.mxu0 %v259_v7  ;;  %p751_p11 = pnand %p750_p2, %p744_p13 }
  0x75   : > { %557 = vmatpush3.msra.mxu0 %v259_v7 }
  0x76   : > { %558 = vmatprep.subr.mxu0 %v258_v9 }
  0x77   : > { %559 = vmatpush3.msra.mxu0 %v258_v9 }
  0x78   : > { %560 = vmatprep.subr.mxu0 %v257_v10 }
  0x79   : > { %561 = vmatpush3.msra.mxu0 %v257_v10 }
  0x7a   : > { %562 = vmatprep.subr.mxu0 %v256_v11 }
  0x7b   : > { %563 = vmatpush3.msra.mxu0 %v256_v11 }
  0x7c   : > { %564 = vmatprep.subr.mxu0 %v255_v12 }
  0x7d   : > { %565 = vmatpush3.msra.mxu0 %v255_v12 }
  0x7e   : > { %566 = vmatprep.subr.mxu0 %v254_v13 }
  0x7f   : > { %567 = vmatpush3.msra.mxu0 %v254_v13 }
  0x80   : > { %568 = vmatprep.subr.mxu0 %v253_v14 }
  0x81   : > { %569 = vmatpush3.msra.mxu0 %v253_v14 }
  0x82   : > { %570 = vmatprep.subr.mxu0 %v252_v15 }
  0x83   : > { %571 = vmatpush3.msra.mxu0 %v252_v15 }
  0x84   : > { %572 = vmatprep.subr.mxu0 %v251_v16 }
  0x85   : > { %573 = vmatpush3.msra.mxu0 %v251_v16 }
  0x86   : > { %574 = vmatprep.subr.mxu0 %v250_v17 }
  0x87   : > { %575 = vmatpush3.msra.mxu0 %v250_v17 }
  0x88   : > { %576 = vmatprep.subr.mxu0 %v249_v18 }
  0x89   : > { %577 = vmatpush3.msra.mxu0 %v249_v18 }
  0x8a   : > { %579 = vmatmul.mubr.f32.vlgmr.msra.gmra.mxu0 %v248_v19 }
  0xf6   : > { %v341_v20 = vpop.xlane.xlu0 %340 }
  0xf7   : > { %v344_v21 = vsub.f32 %v245_v6, %v341_v20 }
  0xf9   : > { %v346_v22 = vmul.f32 1.442695, %v344_v21 }
  0xfa   : > { %v343_v23 = vpop.xlane.xlu0 %342 }
  0xfb   : > { %647 = vpow2.f32 %v346_v22  ;;  %v345_v24 = vsub.f32 %v246_v8, %v343_v23 }
  0xfd   : > { %v348_v25 = vmul.f32 1.442695, %v345_v24 }
  0xff   : > { %649 = vpow2.f32 %v348_v25 }
 0x108   : > { %v648_v26 = vpop.eup %647 }
 0x109   : > { %356 = vadd.xlane.f32.xlu1 %v648_v26 }
 0x10c   : > { %v650_v27 = vpop.eup %649 }
 0x10d   : > { %358 = vadd.xlane.f32.xlu1 %v650_v27 }
 0x14a   : > { %v580_v28 = vpop.f32.mrf.mxu0 }
 0x14b   : > { %v351_v29 = vmul.f32 %v650_v27, %v580_v28 }
 0x14c   : > { %v331_v30 = vpop.f32.mrf.mxu0 }
 0x14d   : > { %v350_v31 = vmul.f32 %v648_v26, %v331_v30  ;;  %354 = vadd.xlane.f32.xlu1 %v351_v29 }
 0x14f   : > { %352 = vadd.xlane.f32.xlu0 %v350_v31 }
 0x192   : > { %v357_v32 = vpop.xlane.xlu1 %356 }
 0x196   : > { %v359_v33 = vpop.xlane.xlu1 %358 }
 0x197   : > { %651 = vrcp.f32 %v359_v33 }
 0x198   : > { %653 = vrcp.f32 %v357_v32 }
 0x1a4   : > { %v652_v34 = vpop.eup %651 }
 0x1a5   : > { %v654_v37 = vpop.eup %653 }
 0x1d6   : > { %v355_v35 = vpop.xlane.xlu1 %354 }
 0x1d7   : > { %v363_v36 = vmul.f32 %v652_v34, %v355_v35 }
 0x1d8   : > { %v353_v38 = vpop.xlane.xlu0 %352 }
 0x1d9   : > { %v519_v39 = vadd.f32 -1e-09, %v363_v36  ;;  %v362_v40 = vmul.f32 %v654_v37, %v353_v38 }
 0x1db   : > { %655 = vrcp.f32 %v519_v39  ;;  %v518_v41 = vadd.f32 -1e-09, %v362_v40 }
 0x1dd   : > { %657 = vrcp.f32 %v518_v41 }
 0x1e8   : > { %v656_v42 = vpop.eup %655 }
 0x1e9   : > { %v521_v43 = vadd.f32 -1.0, %v656_v42 }
 0x1ea   : > { %v658_v44 = vpop.eup %657 }
 0x1eb   : > { %v520_v45 = vadd.f32 -1.0, %v658_v44  ;;  %v374_v47 = vsel %vm372_vm0, %v521_v43, 0.0 }
 0x1ed   : > { %v373_v46 = vsel %vm372_vm0, %v520_v45, 0.0 }
 0x1ee   : > { %v375_v48 = vadd.f32 %v374_v47, %v373_v46 }
 0x1f0   : > { %376 = vadd.xlane.f32.xlu0 %v375_v48 }
 0x279   : > { %v377_v49 = vpop.xlane.xlu0 %376 }
 0x27a   : > { %v378_v50 = vrot.slane %v377_v49, 4 }
 0x27c   : > { %v379_v51 = vadd.f32 %v378_v50, %v377_v49 }
 0x27e   : > { %v380_v52 = vrot.slane %v379_v51, 2 }
 0x280   : > { %v381_v53 = vadd.f32 %v380_v52, %v379_v51 }
 0x282   : > { %v382_v54 = vrot.slane %v381_v53, 1 }
 0x284   : > { %v383_v55 = vadd.f32 %v382_v54, %v381_v53 }
 0x286   : > { %581 = vpush %v383_v55 }
 0x2b7   : > { %s582_s21 = spop %581 }
 0x2b8   : > { %v385_v56 = vstv %s582_s21 }
 0x2b9   : > { %386 = vst [vmem:[%s242_s28] sm:$0xff] %v385_v56 }
 0x2ba   : > { %754 = shalt.err (!%p751_p11)
}
 0x2bb   : > { %s755_s30 = scalar_lea.hbm %s399_s25, 128  ;;  %s759_s4 = scalar_lea.hbm %s1070_s3, 512 }
 0x2bc   : > { %p756_p1 = scmp.ne.s32.totalorder %s399_s25, %s755_s30  ;;  %p760_p7 = scmp.lt.s32.totalorder %s399_s25, %s1070_s3 }
 0x2bd   : > { %p761_p8 = scmp.lt.s32.totalorder %s759_s4, %s755_s30 }
 0x2be   : > { %p757_p4 = pnand %p756_p1, %p1094_p9 }
 0x2bf   : > { %p762_p10 = por %p761_p8, %p760_p7 }
 0x2c0   : > { %p758_p3 = pneg %p757_p4 }
 0x2c2   : > { %p763_p6 = pnand %p762_p10, %p758_p3 }
 0x2c4   : > { %766 = shalt.err (!%p763_p6)
}
 0x2c5   : > { %591 = dma.vmem_to_hbm [thread:$0]  (%p1094_p9), %s1028_s29, 128, %s399_s25, %s388_s26  }
 0x2c6 PF: > { %p611_p12 = scmp.ge.s32.totalorder %s813_s15, 2  ;;  %s413_s27 = sand.u32 1, %s801_s12  }
 0x2c7   : > { %p1095_p13 = scmp.ne.s32.totalorder %s1081_s19, 0  ;;  %s414_s20 = scalar_lea.sflag [#allocation4], %s413_s27 }
 0x2c9   : > { %p605_p0 = pnand %p611_p12, %p1095_p13 }
 0x2cb   : > { %p606_p5 = pneg %p605_p0 }
 0x2cd   : > { %796 = dma.done.wait (%p606_p5), %s414_s20, 128  }
 0x2ce   : > { %798 = vsyncadd (%p606_p5), %s414_s20, 4294967168  ;;  %p19_p2 = scmp.ge.s32.totalorder %s894_s24, 6   ;;  %s1096_s12 = smov %s805_s13 }
 0x2cf   : > { %s1097_s13 = smov %s809_s14  ;;  %s1098_s14 = smov %s914_s5 }
 0x2d0   : > { %s1099_s15 = smov %s894_s24  ;;  %21 = sbr.rel (!%p19_p2) target bundleno = 10 (0xa), region = 94 }
 0x2d5   :  { %419 = vsyncpa [#allocation3], 1 }
 0x2d6   :  { %421 = vsyncpa [#allocation3 + $0x1], 1 }
 0x2d7   :  { %422 = vsyncpa [#allocation6], 1 }
 0x2d8   :  { %424 = vsyncpa [#allocation6 + $0x1], 1 }
 0x2d9   :  { %425 = vsyncpa [#allocation4], 1 }
 0x2da   :  { %427 = vsyncpa [#allocation4 + $0x1], 1 }

</bundles_post_ra>
